<compile_context>
chip_gen: v5e
topology: v5e:2x2
jax: 0.10.0
libtpu: 0.0.40
codegen_flags: <defaults>
</compile_context>

<pallas_src>
import functools

import jax
import jax.numpy as jnp
from jax.experimental import pallas as pl
from jax.experimental.pallas import tpu as pltpu


def _round_up(x, m):
    return (x + m - 1) // m * m


def qmix_kernel(xT_ref, w_ref, b_ref, wv2_ref, bv2_ref, out_ref, *,
                n_agents, embed_dim):
    """Transposed-layout QMIX mixer.

    xT_ref : (n_agents + state_dim, R)  -- [agent_qs ; states] for R rows (lanes = rows)
    w_ref  : (W, n_agents + state_dim)  -- fused hypernet weight (transposed)
    b_ref  : (W, 1)                     -- fused hypernet bias
    wv2_ref: (embed_dim, 1)             -- V[2] weight
    bv2_ref: (1, 1)                     -- V[2] bias
    out_ref: (1, R)                     -- q_tot, lane-dense
    """
    ne = n_agents * embed_dim
    x = xT_ref[...]

    # One fused MXU matmul produces, stacked along sublanes:
    #   [ hyper_w_1(s) | replicated agent_qs | hyper_b_1(s) | hyper_w_final(s) | V[0](s) ]
    h = jnp.dot(w_ref[...], x, preferred_element_type=jnp.float32) + b_ref[...]

    w1 = jnp.abs(h[:ne, :])                                        # |hyper_w_1|  (N*E, R)
    q_rep = h[ne:2 * ne, :]                                        # qs[r, a] at rows a*E..a*E+E-1
    b1 = h[2 * ne:2 * ne + embed_dim, :]                           # hyper_b_1    (E, R)
    wf = jnp.abs(h[2 * ne + embed_dim:2 * ne + 2 * embed_dim, :])  # |w_final|    (E, R)
    vh = jnp.maximum(h[2 * ne + 2 * embed_dim:2 * ne + 3 * embed_dim, :], 0.0)  # V hidden

    # hidden_pre[e, r] = b1[e, r] + sum_a qs[r, a] * |w1|[r, a*E + e]
    prod = w1 * q_rep                                              # full-vreg VPU multiply
    acc = b1
    for a in range(n_agents):                                      # vreg-aligned sublane slices
        acc = acc + prod[a * embed_dim:(a + 1) * embed_dim, :]

    # ELU (alpha = 1), numerically safe for positive inputs.
    hidden = jnp.where(acc > 0, acc, jnp.exp(jnp.minimum(acc, 0.0)) - 1.0)

    # q_tot[r] = hidden[:, r] . w_final[:, r]  +  vh[:, r] . wv2  +  bv2
    contrib = hidden * wf + vh * wv2_ref[...]
    out_ref[...] = jnp.sum(contrib, axis=0, keepdims=True) + bv2_ref[...]   # (1, R) lane-dense


def qmixer_forward(agent_qs, states, params, *, row_tile=512):
    """agent_qs: (bs, T, n_agents); states: (bs, T, state_dim). Returns (bs, T, 1)."""
    bs, T, n_agents = agent_qs.shape
    state_dim = states.shape[-1]
    embed_dim = params["wb1"].shape[1]
    B = bs * T
    ne = n_agents * embed_dim
    in_dim = n_agents + state_dim
    w_total = 2 * ne + 3 * embed_dim

    # Row tiling: large (MXU-filling, multiple of 128) tiles for big inputs; one padded
    # tile for small inputs.  Rows are padded with zeros and sliced off afterwards.
    if B >= row_tile:
        rt = row_tile
    else:
        rt = max(8, _round_up(B, 8))
    B_pad = _round_up(B, rt)
    grid = B_pad // rt

    qs = agent_qs.reshape(B, n_agents).astype(jnp.float32)
    st = states.reshape(B, state_dim).astype(jnp.float32)
    x = jnp.concatenate([qs, st], axis=1)                          # (B, N+S): one DMA stream
    if B_pad != B:
        x = jnp.pad(x, ((0, B_pad - B), (0, 0)))
    xT = x.T                                                       # rows -> lanes

    # Fused hypernet weight (input-major), columns ordered:
    #   [ w1 (N*E, agent-major) | qs-replication (N*E) | b1 (E) | w_final (E) | V[0] (E) ]
    # rows ordered: [ agent_qs inputs (N) ; state inputs (S) ]
    rep = jnp.kron(jnp.eye(n_agents, dtype=jnp.float32),
                   jnp.ones((1, embed_dim), jnp.float32))          # (N, N*E)
    w_qs_rows = jnp.concatenate(
        [jnp.zeros((n_agents, ne), jnp.float32),
         rep,
         jnp.zeros((n_agents, 3 * embed_dim), jnp.float32)], axis=1)
    w_st_rows = jnp.concatenate(
        [params["w1"],
         jnp.zeros((state_dim, ne), jnp.float32),
         params["wb1"], params["wf"], params["wv1"]], axis=1)
    w_big_T = jnp.concatenate([w_qs_rows, w_st_rows], axis=0).T    # (W, N+S)
    b_big_T = jnp.concatenate(
        [params["bw1"], jnp.zeros((1, ne), jnp.float32),
         params["bb1"], params["bwf"], params["bv1"]], axis=1).T   # (W, 1)

    kernel = functools.partial(qmix_kernel, n_agents=n_agents, embed_dim=embed_dim)

    out = pl.pallas_call(
        kernel,
        out_shape=jax.ShapeDtypeStruct((1, B_pad), jnp.float32),
        grid_spec=pltpu.PrefetchScalarGridSpec(
            num_scalar_prefetch=0,
            grid=(grid,),
            in_specs=[
                pl.BlockSpec((in_dim, rt), lambda i: (0, i)),       # row tile (streamed)
                pl.BlockSpec((w_total, in_dim), lambda i: (0, 0)),  # fused weights (resident)
                pl.BlockSpec((w_total, 1), lambda i: (0, 0)),       # fused bias
                pl.BlockSpec((embed_dim, 1), lambda i: (0, 0)),     # V[2] weight
                pl.BlockSpec((1, 1), lambda i: (0, 0)),             # V[2] bias
            ],
            out_specs=pl.BlockSpec((1, rt), lambda i: (0, i)),      # lane-dense output
        ),
        compiler_params=pltpu.CompilerParams(
            dimension_semantics=("parallel",)),
    )(xT, w_big_T, b_big_T, params["wv2"], params["bv2"])

    return out[0, :B].reshape(bs, T, 1)


def qmixer_ref(agent_qs, states, params):
    """Pure-JAX reference matching the PyTorch forward exactly."""
    bs, T, n_agents = agent_qs.shape
    state_dim = states.shape[-1]
    embed_dim = params["wb1"].shape[1]
    st = states.reshape(-1, state_dim).astype(jnp.float32)
    qs = agent_qs.reshape(-1, 1, n_agents).astype(jnp.float32)

    w1 = jnp.abs(st @ params["w1"] + params["bw1"]).reshape(-1, n_agents, embed_dim)
    b1 = (st @ params["wb1"] + params["bb1"]).reshape(-1, 1, embed_dim)
    hidden = jax.nn.elu(jnp.einsum("bij,bjk->bik", qs, w1) + b1)
    wf = jnp.abs(st @ params["wf"] + params["bwf"]).reshape(-1, embed_dim, 1)
    v = (jnp.maximum(st @ params["wv1"] + params["bv1"], 0.0) @ params["wv2"]
         + params["bv2"]).reshape(-1, 1, 1)
    y = jnp.einsum("bij,bjk->bik", hidden, wf) + v
    return y.reshape(bs, -1, 1)


def make_params(key, state_dim, n_agents, embed_dim):
    ks = jax.random.split(key, 10)
    scale = 0.1
    # Linear weights stored pre-transposed as (in_features, out_features).
    return {
        "w1":  scale * jax.random.normal(ks[0], (state_dim, n_agents * embed_dim), jnp.float32),
        "bw1": scale * jax.random.normal(ks[1], (1, n_agents * embed_dim), jnp.float32),
        "wb1": scale * jax.random.normal(ks[2], (state_dim, embed_dim), jnp.float32),
        "bb1": scale * jax.random.normal(ks[3], (1, embed_dim), jnp.float32),
        "wf":  scale * jax.random.normal(ks[4], (state_dim, embed_dim), jnp.float32),
        "bwf": scale * jax.random.normal(ks[5], (1, embed_dim), jnp.float32),
        "wv1": scale * jax.random.normal(ks[6], (state_dim, embed_dim), jnp.float32),
        "bv1": scale * jax.random.normal(ks[7], (1, embed_dim), jnp.float32),
        "wv2": scale * jax.random.normal(ks[8], (embed_dim, 1), jnp.float32),
        "bv2": scale * jax.random.normal(ks[9], (1, 1), jnp.float32),
    }


if __name__ == "__main__":
    # args: n_agents=4, state_shape=(32,), mixing_embed_dim=32, hypernet_layers=1
    bs, T, n_agents, state_dim, embed_dim = 2, 8, 4, 32, 32

    key = jax.random.PRNGKey(0)
    k_q, k_s, k_p = jax.random.split(key, 3)
    agent_qs = jax.random.normal(k_q, (bs, T, n_agents), jnp.float32)
    states = jax.random.normal(k_s, (bs, T, state_dim), jnp.float32)
    params = make_params(k_p, state_dim, n_agents, embed_dim)

    q_tot = qmixer_forward(agent_qs, states, params)
    q_tot = jax.block_until_ready(q_tot)

    q_ref = qmixer_ref(agent_qs, states, params)
    assert q_tot.shape == (bs, T, 1)
    assert jnp.allclose(q_tot, q_ref, atol=3e-5, rtol=3e-5), "mismatch vs reference"

    print("KERNEL_OK")
</pallas_src>

<mosaic_0001>
module attributes {stable_mosaic.version = 11 : i64} {
  func.func @qmix_kernel(%arg0: i32, %arg1: memref<36x16xf32, #tpu.memory_space<vmem>>, %arg2: memref<352x36xf32, #tpu.memory_space<vmem>>, %arg3: memref<352x1xf32, #tpu.memory_space<vmem>>, %arg4: memref<32x1xf32, #tpu.memory_space<vmem>>, %arg5: memref<1x1xf32, #tpu.memory_space<vmem>>, %arg6: memref<1x16xf32, #tpu.memory_space<vmem>>) attributes {dimension_semantics = [#tpu.dimension_semantics<parallel>], iteration_bounds = array<i64: 1>, scalar_prefetch = 0 : i64, scratch_operands = 0 : i64, tpu.core_type = #tpu.core_type<tc>, window_params = [{transform_indices = @transform_0, window_bounds = array<i64: 36, 16>}, {pipeline_mode = #tpu.pipeline_mode<synchronous>, transform_indices = @transform_1, window_bounds = array<i64: 352, 36>}, {pipeline_mode = #tpu.pipeline_mode<synchronous>, transform_indices = @transform_2, window_bounds = array<i64: 352, 1>}, {pipeline_mode = #tpu.pipeline_mode<synchronous>, transform_indices = @transform_3, window_bounds = array<i64: 32, 1>}, {pipeline_mode = #tpu.pipeline_mode<synchronous>, transform_indices = @transform_4, window_bounds = array<i64: 1, 1>}, {transform_indices = @transform_5, window_bounds = array<i64: 1, 16>}]} {
    %c0 = arith.constant 0 : index
    %c0_0 = arith.constant 0 : index
    %0 = vector.load %arg1[%c0, %c0_0] : memref<36x16xf32, #tpu.memory_space<vmem>>, vector<36x16xf32>
    %c0_1 = arith.constant 0 : index
    %c0_2 = arith.constant 0 : index
    %1 = vector.load %arg2[%c0_1, %c0_2] : memref<352x36xf32, #tpu.memory_space<vmem>>, vector<352x36xf32>
    %cst = arith.constant dense<0.000000e+00> : vector<352x16xf32>
    %2 = tpu.matmul %1, %0, %cst {dimension_numbers = #tpu.dot_dimension_numbers<[1], [0], [0], [1], [0, 0, 1, 1], [], []>} : vector<352x36xf32>, vector<36x16xf32>, vector<352x16xf32> -> vector<352x16xf32>
    %c0_3 = arith.constant 0 : index
    %c0_4 = arith.constant 0 : index
    %3 = vector.load %arg3[%c0_3, %c0_4] : memref<352x1xf32, #tpu.memory_space<vmem>>, vector<352x1xf32>
    %4 = vector.broadcast %3 : vector<352x1xf32> to vector<352x16xf32>
    %5 = arith.addf %2, %4 : vector<352x16xf32>
    %6 = vector.extract_strided_slice %5 {offsets = [0, 0], sizes = [128, 16], strides = [1, 1]} : vector<352x16xf32> to vector<128x16xf32>
    %7 = math.absf %6 : vector<128x16xf32>
    %8 = vector.extract_strided_slice %5 {offsets = [128, 0], sizes = [128, 16], strides = [1, 1]} : vector<352x16xf32> to vector<128x16xf32>
    %9 = vector.extract_strided_slice %5 {offsets = [256, 0], sizes = [32, 16], strides = [1, 1]} : vector<352x16xf32> to vector<32x16xf32>
    %10 = vector.extract_strided_slice %5 {offsets = [288, 0], sizes = [32, 16], strides = [1, 1]} : vector<352x16xf32> to vector<32x16xf32>
    %11 = math.absf %10 : vector<32x16xf32>
    %12 = vector.extract_strided_slice %5 {offsets = [320, 0], sizes = [32, 16], strides = [1, 1]} : vector<352x16xf32> to vector<32x16xf32>
    %cst_5 = arith.constant 0.000000e+00 : f32
    %13 = vector.broadcast %cst_5 : f32 to vector<32x16xf32>
    %14 = arith.maximumf %12, %13 : vector<32x16xf32>
    %15 = arith.mulf %7, %8 : vector<128x16xf32>
    %16 = vector.extract_strided_slice %15 {offsets = [0, 0], sizes = [32, 16], strides = [1, 1]} : vector<128x16xf32> to vector<32x16xf32>
    %17 = arith.addf %9, %16 : vector<32x16xf32>
    %18 = vector.extract_strided_slice %15 {offsets = [32, 0], sizes = [32, 16], strides = [1, 1]} : vector<128x16xf32> to vector<32x16xf32>
    %19 = arith.addf %17, %18 : vector<32x16xf32>
    %20 = vector.extract_strided_slice %15 {offsets = [64, 0], sizes = [32, 16], strides = [1, 1]} : vector<128x16xf32> to vector<32x16xf32>
    %21 = arith.addf %19, %20 : vector<32x16xf32>
    %22 = vector.extract_strided_slice %15 {offsets = [96, 0], sizes = [32, 16], strides = [1, 1]} : vector<128x16xf32> to vector<32x16xf32>
    %23 = arith.addf %21, %22 : vector<32x16xf32>
    %cst_6 = arith.constant 0.000000e+00 : f32
    %24 = vector.broadcast %cst_6 : f32 to vector<32x16xf32>
    %25 = arith.cmpf ogt, %23, %24 : vector<32x16xf32>
    %cst_7 = arith.constant 0.000000e+00 : f32
    %26 = vector.broadcast %cst_7 : f32 to vector<32x16xf32>
    %27 = arith.minimumf %23, %26 : vector<32x16xf32>
    %28 = math.exp %27 : vector<32x16xf32>
    %cst_8 = arith.constant 1.000000e+00 : f32
    %29 = vector.broadcast %cst_8 : f32 to vector<32x16xf32>
    %30 = arith.subf %28, %29 : vector<32x16xf32>
    %31 = arith.select %25, %23, %30 : vector<32x16xi1>, vector<32x16xf32>
    %32 = arith.mulf %31, %11 : vector<32x16xf32>
    %c0_9 = arith.constant 0 : index
    %c0_10 = arith.constant 0 : index
    %33 = vector.load %arg4[%c0_9, %c0_10] : memref<32x1xf32, #tpu.memory_space<vmem>>, vector<32x1xf32>
    %34 = vector.broadcast %33 : vector<32x1xf32> to vector<32x16xf32>
    %35 = arith.mulf %14, %34 : vector<32x16xf32>
    %36 = arith.addf %32, %35 : vector<32x16xf32>
    %cst_11 = arith.constant dense<0.000000e+00> : vector<16xf32>
    %37 = vector.multi_reduction <add>, %36, %cst_11 [0] : vector<32x16xf32> to vector<16xf32>
    %38 = vector.shape_cast %37 : vector<16xf32> to vector<1x16xf32>
    %c0_12 = arith.constant 0 : index
    %c0_13 = arith.constant 0 : index
    %39 = vector.load %arg5[%c0_12, %c0_13] : memref<1x1xf32, #tpu.memory_space<vmem>>, vector<1x1xf32>
    %40 = vector.broadcast %39 : vector<1x1xf32> to vector<1x16xf32>
    %41 = arith.addf %38, %40 : vector<1x16xf32>
    %c0_14 = arith.constant 0 : index
    %c0_15 = arith.constant 0 : index
    %42 = vector.load %arg6[%c0_14, %c0_15] : memref<1x16xf32, #tpu.memory_space<vmem>>, vector<1x16xf32>
    tpu.vector_store %arg6[%c0_14, %c0_15], %41 {strides = array<i32>} : memref<1x16xf32, #tpu.memory_space<vmem>>, vector<1x16xf32>,
    return
  }
  func.func @transform_0(%arg0: i32) -> (i32, i32) {
    %c0_i32 = arith.constant 0 : i32
    %c0_i32_0 = arith.constant 0 : i32
    return %c0_i32, %arg0 : i32, i32
  }
  func.func @transform_1(%arg0: i32) -> (i32, i32) {
    %c0_i32 = arith.constant 0 : i32
    %c0_i32_0 = arith.constant 0 : i32
    %c0_i32_1 = arith.constant 0 : i32
    return %c0_i32, %c0_i32_0 : i32, i32
  }
  func.func @transform_2(%arg0: i32) -> (i32, i32) {
    %c0_i32 = arith.constant 0 : i32
    %c0_i32_0 = arith.constant 0 : i32
    %c0_i32_1 = arith.constant 0 : i32
    return %c0_i32, %c0_i32_0 : i32, i32
  }
  func.func @transform_3(%arg0: i32) -> (i32, i32) {
    %c0_i32 = arith.constant 0 : i32
    %c0_i32_0 = arith.constant 0 : i32
    %c0_i32_1 = arith.constant 0 : i32
    return %c0_i32, %c0_i32_0 : i32, i32
  }
  func.func @transform_4(%arg0: i32) -> (i32, i32) {
    %c0_i32 = arith.constant 0 : i32
    %c0_i32_0 = arith.constant 0 : i32
    %c0_i32_1 = arith.constant 0 : i32
    return %c0_i32, %c0_i32_0 : i32, i32
  }
  func.func @transform_5(%arg0: i32) -> (i32, i32) {
    %c0_i32 = arith.constant 0 : i32
    %c0_i32_0 = arith.constant 0 : i32
    return %c0_i32, %arg0 : i32, i32
  }
}

</mosaic_0001>

<bundles_post_ra>
// kernel: tpu_custom_call.1
= control target key start
LH: loop header
LB: loop body
LE: loop exit
PB: predicated region body
PF: predicated region fallthrough
CT: control target
= control target key end

     0   :  { %s1385_s0 = inlined_call_operand.vmem [shape: f32[36,16], index: 0, kind: input, shape index: {}]   ;;  %s1386_s1 = inlined_call_operand.vmem [shape: f32[352,36], index: 1, kind: input, shape index: {}]   ;;  %s1387_s2 = inlined_call_operand.vmem [shape: f32[352,1], index: 2, kind: input, shape index: {}]   ;;  %s1388_s3 = inlined_call_operand.vmem [shape: f32[32,1], index: 3, kind: input, shape index: {}]   ;;  %s1389_s4 = inlined_call_operand.<no memory space> [shape: f32[1,1], index: 4, kind: input, shape index: {}]   ;;  %s1390_s5 = inlined_call_operand.hbm [shape: f32[1,16], index: 5, kind: output, shape index: {}]  }
   0x1   :  { %v10_v0 = vstv %s1389_s4 }
   0x2   :  { %11 = vst [vmem:[#allocation2] sm:$0x1] %v10_v0 }
   0x3   :  { %v27_v1 = vld [vmem:[%s1385_s0 + $0x20] sm:$0xf]  ;;  %vm469_vm0 = vcmask 1043456   ;;  %v881_v2 = vmov 0   ;;  %v74_v4 = vld [vmem:[%s1387_s2 + $0x10] sm:$0xff]  ;;  %v26_v6 = vld [vmem:[%s1385_s0 + $0x18] sm:$0xff] }
   0x4   :  { %846 = vset.pattern.permute.xlu2 %v881_v2  ;;  %845 = vset.pattern.permute.xlu1 %v881_v2  ;;  %v76_v3 = vld [vmem:[%s1387_s2 + $0x20] sm:$0xff]  ;;  %v25_v7 = vld [vmem:[%s1385_s0 + $0x10] sm:$0xff]  ;;  %v24_v8 = vld [vmem:[%s1385_s0 + $0x8] sm:$0xff]  ;;  %vm336_vm1 = vcmask 293888  }
   0x5   :  { %844 = vset.pattern.permute.xlu0 %v881_v2  ;;  %778 = vmatpush.msk.msra.mxu0 %vm469_vm0, %v27_v1  ;;  %v72_v5 = vld [vmem:[%s1387_s2] sm:$0xff]  ;;  %v77_v10 = vld [vmem:[%s1387_s2 + $0x28] sm:$0xff]  ;;  %v75_v11 = vld [vmem:[%s1387_s2 + $0x18] sm:$0xff] }
   0x6   :  { %827 = vmatpush.msk.msra.mxu1 %vm469_vm0, %v27_v1  ;;  %828 = vmatpush.msk.msra.mxu2 %vm469_vm0, %v27_v1  ;;  %v23_v9 = vld [vmem:[%s1385_s0] sm:$0xff]  ;;  %v73_v12 = vld [vmem:[%s1387_s2 + $0x8] sm:$0xff] }
   0x7   :  { %829 = vmatpush.msk.msra.mxu3 %vm469_vm0, %v27_v1  ;;  %138 = vperm.xlu2 %846, %v76_v3   ;;  %v28_v13 = vld [vmem:[%s1386_s1] sm:$0xff] }
   0x8   :  { %128 = vperm.xlu1 %845, %v74_v4   ;;  %118 = vperm.xlu0 %844, %v72_v5  }
   0x9   :  { %485 = vmatpush.msra.mxu0 %v26_v6  ;;  %830 = vmatpush.msra.mxu1 %v26_v6 }
   0xa   :  { %831 = vmatpush.msra.mxu2 %v26_v6  ;;  %832 = vmatpush.msra.mxu3 %v26_v6 }
   0xb   :  { %486 = vmatpush.msra.mxu0 %v25_v7  ;;  %833 = vmatpush.msra.mxu1 %v25_v7 }
   0xc   :  { %834 = vmatpush.msra.mxu2 %v25_v7  ;;  %835 = vmatpush.msra.mxu3 %v25_v7 }
   0xd   :  { %487 = vmatpush.msra.mxu0 %v24_v8  ;;  %836 = vmatpush.msra.mxu1 %v24_v8 }
   0xe   :  { %837 = vmatpush.msra.mxu2 %v24_v8  ;;  %838 = vmatpush.msra.mxu3 %v24_v8 }
   0xf   :  { %488 = vmatpush.msra.mxu0 %v23_v9  ;;  %839 = vmatpush.msra.mxu1 %v23_v9 }
  0x10   :  { %12 = vsyncpa [#allocation4], 0  ;;  %840 = vmatpush.msra.mxu2 %v23_v9  ;;  %841 = vmatpush.msra.mxu3 %v23_v9  ;;  %v39_v14 = vld [vmem:[%s1386_s1 + $0x58] sm:$0xff]  ;;  %v50_v15 = vld [vmem:[%s1386_s1 + $0xb0] sm:$0xff]  ;;  %vm738_vm6 = vcmask 130048   ;;  %s769_s4 = sshll.u32 %s1390_s5, 4  ;;  %s770_s4 = int_to_ptr.hbm [resolvable:$true] %s769_s4 }
  0x11   :  { %143 = vperm.xlu2 %846, %v77_v10   ;;  %133 = vperm.xlu1 %845, %v75_v11   ;;  %v61_v16 = vld [vmem:[%s1386_s1 + $0x108] sm:$0xff]  ;;  %v80_v17 = vld [vmem:[%s1387_s2 + $0x40] sm:$0xff]  ;;  %v79_v18 = vld [vmem:[%s1387_s2 + $0x38] sm:$0xff]  ;;  %vm760_vm7 = vcmask 122880  }
  0x12   :  { %123 = vperm.xlu0 %844, %v73_v12   ;;  %779 = vmatmul.msk.f32.vlgmr.msra.gmra.mxu0 %vm336_vm1, %v28_v13  ;;  %v78_v19 = vld [vmem:[%s1387_s2 + $0x30] sm:$0xff]  ;;  %v29_v20 = vld [vmem:[%s1386_s1 + $0x8] sm:$0xff]  ;;  %v40_v21 = vld [vmem:[%s1386_s1 + $0x60] sm:$0xff] }
  0x13   :  { %790 = vmatmul.msk.f32.vlgmr.msra.gmra.mxu1 %vm336_vm1, %v39_v14  ;;  %801 = vmatmul.msk.f32.vlgmr.msra.gmra.mxu2 %vm336_vm1, %v50_v15  ;;  %v51_v22 = vld [vmem:[%s1386_s1 + $0xb8] sm:$0xff]  ;;  %v62_v23 = vld [vmem:[%s1386_s1 + $0x110] sm:$0xff]  ;;  %v81_v26 = vld [vmem:[%s1387_s2 + $0x48] sm:$0xff] }
  0x14   :  { %812 = vmatmul.msk.f32.vlgmr.msra.gmra.mxu3 %vm336_vm1, %v61_v16  ;;  %v83_v24 = vld [vmem:[%s1387_s2 + $0x58] sm:$0xff]  ;;  %v82_v25 = vld [vmem:[%s1387_s2 + $0x50] sm:$0xff]  ;;  %v41_v28 = vld [vmem:[%s1386_s1 + $0x68] sm:$0xff] }
  0x15   :  { %v30_v27 = vld [vmem:[%s1386_s1 + $0x10] sm:$0xff]  ;;  %v52_v29 = vld [vmem:[%s1386_s1 + $0xc0] sm:$0xff]  ;;  %v63_v30 = vld [vmem:[%s1386_s1 + $0x118] sm:$0xff] }
  0x16   :  { %v86_v31 = vld [vmem:[%s1387_s2 + $0x70] sm:$0xff]  ;;  %v85_v32 = vld [vmem:[%s1387_s2 + $0x68] sm:$0xff]  ;;  %v84_v33 = vld [vmem:[%s1387_s2 + $0x60] sm:$0xff] }
  0x17   :  { %v31_v34 = vld [vmem:[%s1386_s1 + $0x18] sm:$0xff]  ;;  %v42_v35 = vld [vmem:[%s1386_s1 + $0x70] sm:$0xff]  ;;  %v53_v36 = vld [vmem:[%s1386_s1 + $0xc8] sm:$0xff] }
  0x18   :  { %v64_v37 = vld [vmem:[%s1386_s1 + $0x120] sm:$0xff]  ;;  %v89_v38 = vld [vmem:[%s1387_s2 + $0x88] sm:$0xff]  ;;  %v87_v40 = vld [vmem:[%s1387_s2 + $0x78] sm:$0xff] }
  0x19   :  { %158 = vperm.xlu2 %846, %v80_v17   ;;  %153 = vperm.xlu1 %845, %v79_v18   ;;  %v88_v39 = vld [vmem:[%s1387_s2 + $0x80] sm:$0xff]  ;;  %v43_v42 = vld [vmem:[%s1386_s1 + $0x78] sm:$0xff]  ;;  %v54_v43 = vld [vmem:[%s1386_s1 + $0xd0] sm:$0xff] }
  0x1a   :  { %148 = vperm.xlu0 %844, %v78_v19   ;;  %780 = vmatmul.msk.f32.gmra.mxu0 %vm336_vm1, %v29_v20  ;;  %v32_v41 = vld [vmem:[%s1386_s1 + $0x20] sm:$0xff]  ;;  %v65_v44 = vld [vmem:[%s1386_s1 + $0x128] sm:$0xff]  ;;  %v91_v46 = vld [vmem:[%s1387_s2 + $0x98] sm:$0xff] }
  0x1b   :  { %791 = vmatmul.msk.f32.gmra.mxu1 %vm336_vm1, %v40_v21  ;;  %802 = vmatmul.msk.f32.gmra.mxu2 %vm336_vm1, %v51_v22  ;;  %v92_v45 = vld [vmem:[%s1387_s2 + $0xa0] sm:$0xff]  ;;  %v90_v47 = vld [vmem:[%s1387_s2 + $0x90] sm:$0xff]  ;;  %v33_v48 = vld [vmem:[%s1386_s1 + $0x28] sm:$0xff] }
  0x1c   :  { %813 = vmatmul.msk.f32.gmra.mxu3 %vm336_vm1, %v62_v23  ;;  %v44_v49 = vld [vmem:[%s1386_s1 + $0x80] sm:$0xff]  ;;  %v55_v50 = vld [vmem:[%s1386_s1 + $0xd8] sm:$0xff]  ;;  %v66_v51 = vld [vmem:[%s1386_s1 + $0x130] sm:$0xff] }
  0x1d   :  { %v95_v52 = vld [vmem:[%s1387_s2 + $0xb8] sm:$0xff]  ;;  %v94_v53 = vld [vmem:[%s1387_s2 + $0xb0] sm:$0xff]  ;;  %v93_v54 = vld [vmem:[%s1387_s2 + $0xa8] sm:$0xff] }
  0x1e   :  { %v34_v55 = vld [vmem:[%s1386_s1 + $0x30] sm:$0xff]  ;;  %v45_v56 = vld [vmem:[%s1386_s1 + $0x88] sm:$0xff]  ;;  %v56_v57 = vld [vmem:[%s1386_s1 + $0xe0] sm:$0xff] }
  0x1f   :  { %v67_v58 = vld [vmem:[%s1386_s1 + $0x138] sm:$0xff]  ;;  %v98_v59 = vld [vmem:[%s1387_s2 + $0xd0] sm:$0xff]  ;;  %v97_v60 = vld [vmem:[%s1387_s2 + $0xc8] sm:$0xff] }
  0x20   :  { %v96_v61 = vld [vmem:[%s1387_s2 + $0xc0] sm:$0xff]  ;;  %v35_v62 = vld [vmem:[%s1386_s1 + $0x38] sm:$0xff]  ;;  %v46_v63 = vld [vmem:[%s1386_s1 + $0x90] sm:$0xff] }
  0x21   :  { %173 = vperm.xlu2 %846, %v83_v24   ;;  %168 = vperm.xlu1 %845, %v82_v25   ;;  %v57_v0 = vld [vmem:[%s1386_s1 + $0xe8] sm:$0xff]  ;;  %v68_v1 = vld [vmem:[%s1386_s1 + $0x140] sm:$0xff]  ;;  %v99_v4 = vld [vmem:[%s1387_s2 + $0xd8] sm:$0xff] }
  0x22   :  { %163 = vperm.xlu0 %844, %v81_v26   ;;  %781 = vmatmul.msk.f32.gmra.mxu0 %vm336_vm1, %v30_v27  ;;  %v101_v2 = vld [vmem:[%s1387_s2 + $0xe8] sm:$0xff]  ;;  %v100_v3 = vld [vmem:[%s1387_s2 + $0xe0] sm:$0xff]  ;;  %v47_v6 = vld [vmem:[%s1386_s1 + $0x98] sm:$0xff] }
  0x23   :  { %792 = vmatmul.msk.f32.gmra.mxu1 %vm336_vm1, %v41_v28  ;;  %803 = vmatmul.msk.f32.gmra.mxu2 %vm336_vm1, %v52_v29  ;;  %v36_v5 = vld [vmem:[%s1386_s1 + $0x40] sm:$0xff]  ;;  %v58_v7 = vld [vmem:[%s1386_s1 + $0xf0] sm:$0xff]  ;;  %v69_v8 = vld [vmem:[%s1386_s1 + $0x148] sm:$0xff] }
  0x24   :  { %814 = vmatmul.msk.f32.gmra.mxu3 %vm336_vm1, %v63_v30  ;;  %v104_v9 = vld [vmem:[%s1387_s2 + $0x100] sm:$0xff]  ;;  %v103_v10 = vld [vmem:[%s1387_s2 + $0xf8] sm:$0xff]  ;;  %v102_v11 = vld [vmem:[%s1387_s2 + $0xf0] sm:$0xff] }
  0x25   :  { %v37_v12 = vld [vmem:[%s1386_s1 + $0x48] sm:$0xff]  ;;  %v48_v13 = vld [vmem:[%s1386_s1 + $0xa0] sm:$0xff]  ;;  %v59_v14 = vld [vmem:[%s1386_s1 + $0xf8] sm:$0xff] }
  0x26   :  { %v70_v15 = vld [vmem:[%s1386_s1 + $0x150] sm:$0xff]  ;;  %v107_v16 = vld [vmem:[%s1387_s2 + $0x118] sm:$0xff]  ;;  %v105_v18 = vld [vmem:[%s1387_s2 + $0x108] sm:$0xff] }
  0x27   :  { %v106_v17 = vld [vmem:[%s1387_s2 + $0x110] sm:$0xff]  ;;  %v49_v20 = vld [vmem:[%s1386_s1 + $0xa8] sm:$0xff]  ;;  %v60_v21 = vld [vmem:[%s1386_s1 + $0x100] sm:$0xff] }
  0x28   :  { %v38_v19 = vld [vmem:[%s1386_s1 + $0x50] sm:$0xff]  ;;  %v71_v22 = vld [vmem:[%s1386_s1 + $0x158] sm:$0xff]  ;;  %v112_v24 = vld [vmem:[%s1387_s2 + $0x140] sm:$0xff] }
  0x29   :  { %188 = vperm.xlu2 %846, %v86_v31   ;;  %183 = vperm.xlu1 %845, %v85_v32   ;;  %v109_v25 = vld [vmem:[%s1387_s2 + $0x128] sm:$0xff]  ;;  %v108_v26 = vld [vmem:[%s1387_s2 + $0x120] sm:$0xff]  ;;  %v114_v28 = vld [vmem:[%s1387_s2 + $0x150] sm:$0xff] }
  0x2a   :  { %178 = vperm.xlu0 %844, %v84_v33   ;;  %782 = vmatmul.msk.f32.gmra.mxu0 %vm336_vm1, %v31_v34  ;;  %v110_v29 = vld [vmem:[%s1387_s2 + $0x130] sm:$0xff]  ;;  %v113_v30 = vld [vmem:[%s1387_s2 + $0x148] sm:$0xff]  ;;  %v706_v32 = vld [vmem:[%s1388_s3] sm:$0xff] }
  0x2b   :  { %793 = vmatmul.msk.f32.gmra.mxu1 %vm336_vm1, %v42_v35  ;;  %804 = vmatmul.msk.f32.gmra.mxu2 %vm336_vm1, %v53_v36  ;;  %v115_v33 = vld [vmem:[%s1387_s2 + $0x158] sm:$0xff] }
  0x2c   :  { %815 = vmatmul.msk.f32.gmra.mxu3 %vm336_vm1, %v64_v37  ;;  %v111_v34 = vld [vmem:[%s1387_s2 + $0x138] sm:$0xff]  ;;  %s882_s2 = smov [#allocation3]  }
  0x2d   :  { %v709_v37 = vld [vmem:[%s1388_s3 + $0x18] sm:$0xff] }
  0x31   :  { %203 = vperm.xlu2 %846, %v89_v38   ;;  %198 = vperm.xlu1 %845, %v88_v39   ;;  %v708_v38 = vld [vmem:[%s1388_s3 + $0x10] sm:$0xff]  ;;  %v707_v39 = vld [vmem:[%s1388_s3 + $0x8] sm:$0xff]  ;;  %s767_s3 = sshll.u32 %s882_s2, 4  ;;  %s768_s3 = int_to_ptr.vmem [resolvable:$true] %s767_s3 }
  0x32   :  { %193 = vperm.xlu0 %844, %v87_v40   ;;  %783 = vmatmul.msk.f32.gmra.mxu0 %vm336_vm1, %v32_v41 }
  0x33   :  { %794 = vmatmul.msk.f32.gmra.mxu1 %vm336_vm1, %v43_v42  ;;  %805 = vmatmul.msk.f32.gmra.mxu2 %vm336_vm1, %v54_v43  ;;  %v752_v43 = vld [vmem:[#allocation2] sm:$0x1] }
  0x34   :  { %816 = vmatmul.msk.f32.gmra.mxu3 %vm336_vm1, %v65_v44 }
  0x39   :  { %218 = vperm.xlu2 %846, %v92_v45   ;;  %213 = vperm.xlu1 %845, %v91_v46  }
  0x3a   :  { %208 = vperm.xlu0 %844, %v90_v47   ;;  %784 = vmatmul.msk.f32.gmra.mxu0 %vm336_vm1, %v33_v48 }
  0x3b   :  { %795 = vmatmul.msk.f32.gmra.mxu1 %vm336_vm1, %v44_v49  ;;  %806 = vmatmul.msk.f32.gmra.mxu2 %vm336_vm1, %v55_v50 }
  0x3c   :  { %817 = vmatmul.msk.f32.gmra.mxu3 %vm336_vm1, %v66_v51 }
  0x41   :  { %233 = vperm.xlu2 %846, %v95_v52   ;;  %228 = vperm.xlu1 %845, %v94_v53  }
  0x42   :  { %223 = vperm.xlu0 %844, %v93_v54   ;;  %785 = vmatmul.msk.f32.gmra.mxu0 %vm336_vm1, %v34_v55 }
  0x43   :  { %796 = vmatmul.msk.f32.gmra.mxu1 %vm336_vm1, %v45_v56  ;;  %807 = vmatmul.msk.f32.gmra.mxu2 %vm336_vm1, %v56_v57 }
  0x44   :  { %818 = vmatmul.msk.f32.gmra.mxu3 %vm336_vm1, %v67_v58 }
  0x49   :  { %248 = vperm.xlu2 %846, %v98_v59   ;;  %243 = vperm.xlu1 %845, %v97_v60  }
  0x4a   :  { %238 = vperm.xlu0 %844, %v96_v61   ;;  %786 = vmatmul.msk.f32.gmra.mxu0 %vm336_vm1, %v35_v62 }
  0x4b   :  { %797 = vmatmul.msk.f32.gmra.mxu1 %vm336_vm1, %v46_v63  ;;  %808 = vmatmul.msk.f32.gmra.mxu2 %vm336_vm1, %v57_v0 }
  0x4c   :  { %819 = vmatmul.msk.f32.gmra.mxu3 %vm336_vm1, %v68_v1 }
  0x51   :  { %263 = vperm.xlu2 %846, %v101_v2   ;;  %258 = vperm.xlu1 %845, %v100_v3  }
  0x52   :  { %253 = vperm.xlu0 %844, %v99_v4   ;;  %787 = vmatmul.msk.f32.gmra.mxu0 %vm336_vm1, %v36_v5 }
  0x53   :  { %798 = vmatmul.msk.f32.gmra.mxu1 %vm336_vm1, %v47_v6  ;;  %809 = vmatmul.msk.f32.gmra.mxu2 %vm336_vm1, %v58_v7 }
  0x54   :  { %820 = vmatmul.msk.f32.gmra.mxu3 %vm336_vm1, %v69_v8 }
  0x59   :  { %278 = vperm.xlu2 %846, %v104_v9   ;;  %273 = vperm.xlu1 %845, %v103_v10  }
  0x5a   :  { %268 = vperm.xlu0 %844, %v102_v11   ;;  %788 = vmatmul.msk.f32.gmra.mxu0 %vm336_vm1, %v37_v12 }
  0x5b   :  { %799 = vmatmul.msk.f32.gmra.mxu1 %vm336_vm1, %v48_v13  ;;  %810 = vmatmul.msk.f32.gmra.mxu2 %vm336_vm1, %v59_v14 }
  0x5c   :  { %821 = vmatmul.msk.f32.gmra.mxu3 %vm336_vm1, %v70_v15 }
  0x61   :  { %293 = vperm.xlu2 %846, %v107_v16   ;;  %288 = vperm.xlu1 %845, %v106_v17   ;;  %v1212_v23 = vpop.permute.xlu2 %138 }
  0x62   :  { %283 = vperm.xlu0 %844, %v105_v18   ;;  %789 = vmatmul.msk.f32.gmra.mxu0 %vm336_vm1, %v38_v19 }
  0x63   :  { %800 = vmatmul.msk.f32.gmra.mxu1 %vm336_vm1, %v49_v20  ;;  %811 = vmatmul.msk.f32.gmra.mxu2 %vm336_vm1, %v60_v21 }
  0x64   :  { %822 = vmatmul.msk.f32.gmra.mxu3 %vm336_vm1, %v71_v22 }
  0x69   :  { %318 = vperm.xlu2 %846, %v112_v24   ;;  %303 = vperm.xlu1 %845, %v109_v25  }
  0x6a   :  { %298 = vperm.xlu0 %844, %v108_v26  }
  0x6b   :  { %v1226_v27 = vpop.permute.xlu2 %143 }
  0x71   :  { %328 = vperm.xlu2 %846, %v114_v28   ;;  %308 = vperm.xlu1 %845, %v110_v29  }
  0x72   :  { %323 = vperm.xlu0 %844, %v113_v30  }
  0x73   :  { %v1237_v31 = vpop.permute.xlu2 %158 }
  0x79   :  { %712 = vperm.xlu2 %846, %v706_v32   ;;  %333 = vperm.xlu1 %845, %v115_v33  }
  0x7a   :  { %313 = vperm.xlu0 %844, %v111_v34   ;;  %v1248_v35 = vpop.permute.xlu1 %128  ;;  %v119_v36 = vpop.permute.xlu0 %118 }
  0x7b   :  { %v174_v40 = vpop.permute.xlu2 %173 }
  0x81   :  { %727 = vperm.xlu2 %846, %v709_v37   ;;  %722 = vperm.xlu1 %845, %v708_v38  }
  0x82   :  { %717 = vperm.xlu0 %844, %v707_v39  }
  0x83   :  { %v1259_v41 = vpop.permute.xlu1 %133  ;;  %v1261_v44 = vpop.permute.xlu2 %188 }
  0x84   :  { %v124_v42 = vpop.permute.xlu0 %123 }
  0x8a   :  { %755 = vperm.xlu0 %844, %v752_v43  }
  0x8b   :  { %v154_v45 = vpop.permute.xlu1 %153  ;;  %v1269_v52 = vpop.permute.xlu2 %203 }
  0x8c   :  { %v149_v46 = vpop.permute.xlu0 %148 }
  0x8f   :  { %v490_v47 = vpop.f32.mrf.mxu0 }
  0x90   :  { %v1263_v48 = vadd.f32 %v490_v47, %v119_v36  ;;  %v523_v49 = vpop.f32.mrf.mxu1 }
  0x91   :  { %v1265_v50 = vadd.f32 %v523_v49, %v174_v40 }
  0x93   :  { %v1267_v51 = vpop.permute.xlu1 %168  ;;  %v1279_v62 = vpop.permute.xlu2 %218 }
  0x94   :  { %v1271_v53 = vpop.permute.xlu0 %163 }
  0x96   :  { %v556_v54 = vpop.f32.mrf.mxu2 }
  0x97   :  { %v1273_v55 = vpop.f32.mrf.mxu3  ;;  %v493_v56 = vpop.f32.mrf.mxu0 }
  0x98   :  { %v1275_v57 = vadd.f32 %v493_v56, %v124_v42  ;;  %v526_v58 = vpop.f32.mrf.mxu1 }
  0x9b   :  { %v184_v59 = vpop.permute.xlu1 %183  ;;  %v234_v9 = vpop.permute.xlu2 %233 }
  0x9c   :  { %v179_v60 = vpop.permute.xlu0 %178 }
  0x9d   :  { %v1277_v61 = vadd.f32 %v526_v58, %v179_v60 }
  0x9e   :  { %v559_v63 = vpop.f32.mrf.mxu2 }
  0x9f   :  { %1391 = vst [vmem:[#allocation6_spill] sm:$0xff] %v1277_v61  ;;  %v1281_v0 = vpop.f32.mrf.mxu3  ;;  %v496_v1 = vpop.f32.mrf.mxu0  ;;  %v560_v58 = vadd.f32 %v559_v63, %v234_v9 }
  0xa0   :  { %v529_v2 = vpop.f32.mrf.mxu1 }
  0xa1   :  { %v1283_v3 = vadd.f32 %v529_v2, %v184_v59 }
  0xa3   :  { %v1285_v4 = vpop.permute.xlu1 %198  ;;  %v1299_v17 = vpop.permute.xlu2 %248 }
  0xa4   :  { %v1287_v5 = vpop.permute.xlu0 %193 }
  0xa6   :  { %v1289_v6 = vpop.f32.mrf.mxu2 }
  0xa7   :  { %v595_v7 = vpop.f32.mrf.mxu3  ;;  %v499_v8 = vpop.f32.mrf.mxu0 }
  0xa8   :  { %v1291_v10 = vpop.f32.mrf.mxu1 }
  0xab   :  { %v214_v11 = vpop.permute.xlu1 %213  ;;  %v1311_v26 = vpop.permute.xlu2 %263 }
  0xac   :  { %v209_v12 = vpop.permute.xlu0 %208 }
  0xae   :  { %v1293_v13 = vpop.f32.mrf.mxu2 }
  0xaf   :  { %v1295_v14 = vpop.f32.mrf.mxu3  ;;  %v1297_v15 = vpop.f32.mrf.mxu0 }
  0xb0   :  { %1392 = vst [vmem:[#allocation7_spill] sm:$0xff] %v1295_v14  ;;  %v535_v16 = vpop.f32.mrf.mxu1 }
  0xb3   :  { %v229_v18 = vpop.permute.xlu1 %228  ;;  %v1319_v42 = vpop.permute.xlu2 %278 }
  0xb4   :  { %v1301_v19 = vpop.permute.xlu0 %223  ;;  %v557_v34 = vadd.f32 %v556_v54, %v229_v18  ;;  %v500_v54 = vadd.f32 %v499_v8, %v1259_v41  ;;  %v633_v8 = vand.u32 2147483647, %v1265_v50 }
  0xb6   :  { %v1303_v20 = vpop.f32.mrf.mxu2 }
  0xb7   :  { %v505_v21 = vpop.f32.mrf.mxu0  ;;  %v1307_v24 = vpop.f32.mrf.mxu3 }
  0xb8   :  { %v1305_v22 = vpop.f32.mrf.mxu1  ;;  %1393 = vst [vmem:[#allocation8_spill] sm:$0xff] %v1307_v24  ;;  %v625_v24 = vand.u32 2147483647, %v500_v54 }
  0xbb   :  { %v1309_v25 = vpop.permute.xlu1 %243 }
  0xbc   :  { %v1313_v28 = vpop.permute.xlu0 %238 }
  0xbe   :  { %v571_v29 = vpop.f32.mrf.mxu2 }
  0xbf   :  { %v508_v30 = vpop.f32.mrf.mxu0  ;;  %v1315_v37 = vpop.f32.mrf.mxu3 }
  0xc0   :  { %v509_v32 = vadd.f32 %v508_v30, %v149_v46  ;;  %v541_v33 = vpop.f32.mrf.mxu1  ;;  %1394 = vst [vmem:[#allocation9_spill] sm:$0xff] %v1315_v37  ;;  %v497_v30 = vadd.f32 %v496_v1, %v1248_v35 }
  0xc2   :  { %v628_v36 = vand.u32 2147483647, %v509_v32 }
  0xc3   :  { %v1317_v38 = vpop.permute.xlu1 %258 }
  0xc4   :  { %1395 = vst [vmem:[#allocation10_spill] sm:$0xff] %v1317_v38  ;;  %v652_v39 = vmul.f32 %v628_v36, %v557_v34  ;;  %v254_v40 = vpop.permute.xlu0 %253  ;;  %v294_v36 = vpop.permute.xlu2 %293 }
  0xc5   :  { %v572_v63 = vadd.f32 %v571_v29, %v254_v40  ;;  %v623_v29 = vand.u32 2147483647, %v1275_v57  ;;  %v533_v40 = vadd.f32 %v1291_v10, %v1261_v44  ;;  %v539_v44 = vadd.f32 %v1305_v22, %v1285_v4 }
  0xc6   :  { %v1321_v43 = vpop.f32.mrf.mxu2 }
  0xc7   :  { %1396 = vst [vmem:[#allocation11_spill] sm:$0xff] %v1321_v43  ;;  %v511_v47 = vpop.f32.mrf.mxu0  ;;  %v1324_v18 = vpop.f32.mrf.mxu3  ;;  %v657_v43 = vmul.f32 %v633_v8, %v572_v63  ;;  %v636_v63 = vand.u32 2147483647, %v533_v40 }
  0xc8   :  { %v512_v49 = vadd.f32 %v511_v47, %v154_v45  ;;  %v544_v56 = vpop.f32.mrf.mxu1  ;;  %1397 = vst [vmem:[#allocation12_spill] sm:$0xff] %v1324_v18  ;;  %v624_v45 = vand.u32 2147483647, %v497_v30  ;;  %v596_v47 = vadd.f32 %v595_v7, %v294_v36 }
  0xc9   :  { %v545_v14 = vadd.f32 %v544_v56, %v209_v12 }
  0xca   :  { %v629_v59 = vand.u32 2147483647, %v512_v49 }
  0xcb   :  { %v274_v60 = vpop.permute.xlu1 %273 }
  0xcc   :  { %v653_v46 = vmul.f32 %v629_v59, %v560_v58  ;;  %v269_v2 = vpop.permute.xlu0 %268  ;;  %v648_v58 = vmul.f32 %v624_v45, %v545_v14  ;;  %v506_v14 = vadd.f32 %v505_v21, %v1226_v27  ;;  %v622_v45 = vand.u32 2147483647, %v1263_v48 }
  0xce   :  { %v577_v32 = vpop.f32.mrf.mxu2  ;;  %v627_v57 = vand.u32 2147483647, %v506_v14 }
  0xcf   :  { %v514_v34 = vpop.f32.mrf.mxu0  ;;  %v1329_v38 = vpop.f32.mrf.mxu3 }
  0xd0   :  { %v547_v37 = vpop.f32.mrf.mxu1  ;;  %v515_v36 = vadd.f32 %v514_v34, %v1237_v31 }
  0xd1   :  { %v548_v61 = vadd.f32 %v547_v37, %v214_v11 }
  0xd3   :  { %v649_v9 = vmul.f32 %v625_v24, %v548_v61  ;;  %v289_v49 = vpop.permute.xlu1 %288  ;;  %v536_v61 = vadd.f32 %v535_v16, %v1287_v5  ;;  %v1344_v16 = vpop.permute.xlu2 %318 }
  0xd4   :  { %v593_v59 = vadd.f32 %v1281_v0, %v289_v49  ;;  %v284_v41 = vpop.permute.xlu0 %283  ;;  %v542_v0 = vadd.f32 %v541_v33, %v1269_v52 }
  0xd5   :  { %v665_v18 = vadd.f32 %v649_v9, %v596_v47  ;;  %v637_v5 = vand.u32 2147483647, %v536_v61  ;;  %v590_v27 = vadd.f32 %v1273_v55, %v284_v41  ;;  %v566_v55 = vadd.f32 %v1293_v13, %v1309_v25 }
  0xd6   :  { %v664_v35 = vadd.f32 %v648_v58, %v593_v59  ;;  %v580_v1 = vpop.f32.mrf.mxu2  ;;  %v647_v54 = vmul.f32 %v623_v29, %v542_v0  ;;  %v635_v47 = vand.u32 2147483647, %v1283_v3  ;;  %v630_v41 = vand.u32 2147483647, %v515_v36  ;;  %v1402_v36 = vld [vmem:[#allocation9_spill] sm:$0xff] }
  0xd7   :  { %v669_v12 = vadd.f32 %v665_v18, %v653_v46  ;;  %v517_v56 = vpop.f32.mrf.mxu0  ;;  %v1352_v18 = vpop.f32.mrf.mxu3  ;;  %v563_v3 = vadd.f32 %v1289_v6, %v1313_v28 }
  0xd8   :  { %v668_v11 = vadd.f32 %v664_v35, %v652_v39  ;;  %v550_v37 = vpop.f32.mrf.mxu1  ;;  %v518_v50 = vadd.f32 %v517_v56, %v1271_v53  ;;  %v569_v53 = vadd.f32 %v1303_v20, %v1299_v17  ;;  %v581_v17 = vadd.f32 %v580_v1, %v269_v2  ;;  %v1398_v35 = vld [vmem:[#allocation10_spill] sm:$0xff]  ;;  %v1399_v1 = vld [vmem:[#allocation11_spill] sm:$0xff] }
  0xd9   :  { %v673_v7 = vadd.f32 %v669_v12, %v657_v43  ;;  %v503_v43 = vadd.f32 %v1297_v15, %v1212_v23  ;;  %v663_v4 = vadd.f32 %v647_v54, %v590_v27  ;;  %v551_v49 = vadd.f32 %v550_v37, %v1279_v62 }
  0xda   :  { %v631_v23 = vand.u32 2147483647, %v518_v50  ;;  %v646_v2 = vmul.f32 %v622_v45, %v539_v44  ;;  %v575_v62 = vadd.f32 %v1399_v1, %v1398_v35  ;;  %v1400_v50 = vld [vmem:[#allocation6_spill] sm:$0xff]  ;;  %v654_v40 = vmul.f32 %v630_v41, %v563_v3  ;;  %v1403_v45 = vld [vmem:[#allocation12_spill] sm:$0xff] }
  0xdb   :  { %v1340_v46 = vpop.permute.xlu1 %303  ;;  %v329_v37 = vpop.permute.xlu2 %328  ;;  %v634_v29 = vand.u32 2147483647, %v1400_v50 }
  0xdc   :  { %v1333_v24 = vpop.permute.xlu0 %298 }
  0xdd   :  { %v658_v27 = vmul.f32 %v634_v29, %v575_v62 }
  0xde   :  { %v583_v39 = vpop.f32.mrf.mxu2 }
  0xdf   :  { %v584_v21 = vadd.f32 %v583_v39, %v274_v60  ;;  %v520_v52 = vpop.f32.mrf.mxu0  ;;  %v578_v60 = vadd.f32 %v577_v32, %v1311_v26  ;;  %v626_v26 = vand.u32 2147483647, %v503_v43  ;;  %v660_v32 = vmul.f32 %v636_v63, %v581_v17  ;;  %v616_v39 = vpop.f32.mrf.mxu3 }
  0xe0   :  { %v521_v10 = vadd.f32 %v520_v52, %v1267_v51  ;;  %v553_v33 = vpop.f32.mrf.mxu1  ;;  %v611_v63 = vadd.f32 %v1329_v38, %v1344_v16 }
  0xe1   :  { %v661_v15 = vmul.f32 %v637_v5, %v584_v21  ;;  %v554_v30 = vadd.f32 %v553_v33, %v1301_v19  ;;  %v655_v19 = vmul.f32 %v631_v23, %v566_v55  ;;  %v659_v59 = vmul.f32 %v635_v47, %v578_v60 }
  0xe2   :  { %v632_v20 = vand.u32 2147483647, %v521_v10  ;;  %v642_v41 = vmax.f32 %v611_v63, 0.0 }
  0xe3   :  { %v1359_v22 = vadd.f32 %v673_v7, %v661_v15  ;;  %v651_v51 = vmul.f32 %v627_v57, %v554_v30  ;;  %v309_v56 = vpop.permute.xlu1 %308  ;;  %v650_v7 = vmul.f32 %v626_v26, %v551_v49  ;;  %v713_v10 = vpop.permute.xlu2 %712  ;;  %v1401_v30 = vld [vmem:[#allocation8_spill] sm:$0xff] }
  0xe4   :  { %v656_v9 = vmul.f32 %v632_v20, %v569_v53  ;;  %v324_v34 = vpop.permute.xlu0 %323  ;;  %v602_v55 = vadd.f32 %v1401_v30, %v1340_v46  ;;  %v730_v62 = vmul.f32 %v713_v10, %v642_v41 }
  0xe5   :  { %v685_v13 = vmin.f32 %v1359_v22, 0.0  ;;  %v667_v25 = vadd.f32 %v663_v4, %v651_v51  ;;  %v605_v4 = vadd.f32 %v1402_v36, %v309_v56  ;;  %v614_v51 = vadd.f32 %v1352_v18, %v324_v34 }
  0xe6   :  { %v672_v31 = vadd.f32 %v668_v11, %v656_v9  ;;  %v586_v58 = vpop.f32.mrf.mxu2  ;;  %v1404_v9 = vld [vmem:[#allocation7_spill] sm:$0xff]  ;;  %v639_v46 = vand.u32 2147483647, %v602_v55  ;;  %vm681_vm4 = vcmp.gt.f32.partialorder %v1359_v22, 0.0 }
  0xe7   :  { %v671_v8 = vadd.f32 %v667_v25, %v655_v19  ;;  %v587_v48 = vadd.f32 %v586_v58, %v1319_v42  ;;  %v692_v61 = vmul.f32 1.442695, %v685_v13  ;;  %v619_v54 = vpop.f32.mrf.mxu3  ;;  %v599_v19 = vadd.f32 %v1404_v9, %v1333_v24 }
  0xe8   :  { %v676_v12 = vadd.f32 %v672_v31, %v660_v32  ;;  %v617_v25 = vadd.f32 %v616_v39, %v329_v37  ;;  %v640_v31 = vand.u32 2147483647, %v605_v4  ;;  %v643_v34 = vmax.f32 %v614_v51, 0.0 }
  0xe9   :  { %v675_v14 = vadd.f32 %v671_v8, %v659_v59  ;;  %v662_v11 = vadd.f32 %v646_v2, %v587_v48  ;;  %847 = vpow2.f32 %v692_v61  ;;  %v638_v38 = vand.u32 2147483647, %v599_v19 }
  0xea   :  { %v684_v0 = vmin.f32 %v676_v12, 0.0  ;;  %vm680_vm3 = vcmp.gt.f32.partialorder %v676_v12, 0.0  ;;  %v644_v3 = vmax.f32 %v617_v25, 0.0 }
  0xeb   :  { %v666_v43 = vadd.f32 %v662_v11, %v650_v7  ;;  %v683_v42 = vmin.f32 %v675_v14, 0.0  ;;  %v334_v57 = vpop.permute.xlu1 %333  ;;  %vm679_vm2 = vcmp.gt.f32.partialorder %v675_v14, 0.0  ;;  %v728_v48 = vpop.permute.xlu2 %727 }
  0xec   :  { %v690_v5 = vmul.f32 1.442695, %v684_v0  ;;  %v314_v52 = vpop.permute.xlu0 %313  ;;  %v620_v17 = vadd.f32 %v619_v54, %v334_v57 }
  0xed   :  { %v670_v6 = vadd.f32 %v666_v43, %v654_v40  ;;  %v688_v28 = vmul.f32 1.442695, %v683_v42  ;;  %v608_v47 = vadd.f32 %v1403_v45, %v314_v52 }
  0xee   :  { %849 = vpow2.f32 %v690_v5  ;;  %v645_v2 = vmax.f32 %v620_v17, 0.0 }
  0xef   :  { %v674_v21 = vadd.f32 %v670_v6, %v658_v27  ;;  %851 = vpow2.f32 %v688_v28  ;;  %v848_v44 = vpop.eup %847  ;;  %v641_v58 = vand.u32 2147483647, %v608_v47 }
  0xf0   :  { %v826_v49 = vadd.f32 -1.0, %v848_v44 }
  0xf1   :  { %v682_v53 = vmin.f32 %v674_v21, 0.0  ;;  %vm678_vm5 = vcmp.gt.f32.partialorder %v674_v21, 0.0 }
  0xf2   :  { %v701_v24 = vsel %vm681_vm4, %v1359_v22, %v826_v49 }
  0xf3   :  { %v686_v33 = vmul.f32 1.442695, %v682_v53  ;;  %v723_v8 = vpop.permute.xlu1 %722  ;;  %v705_v37 = vmul.f32 %v701_v24, %v641_v58 }
  0xf4   :  { %v850_v23 = vpop.eup %849  ;;  %v718_v32 = vpop.permute.xlu0 %717  ;;  %v732_v7 = vmul.f32 %v723_v8, %v644_v3 }
  0xf5   :  { %v852_v15 = vpop.eup %851  ;;  %853 = vpow2.f32 %v686_v33  ;;  %v825_v60 = vadd.f32 -1.0, %v850_v23  ;;  %v731_v1 = vmul.f32 %v718_v32, %v643_v34 }
  0xf6   :  { %v824_v20 = vadd.f32 -1.0, %v852_v15 }
  0xf7   :  { %v700_v26 = vsel %vm680_vm3, %v676_v12, %v825_v60  ;;  %v733_v12 = vmul.f32 %v728_v48, %v645_v2 }
  0xf8   :  { %v699_v13 = vsel %vm679_vm2, %v675_v14, %v824_v20  ;;  %v704_v35 = vmul.f32 %v700_v26, %v640_v31 }
  0xf9   :  { %v703_v59 = vmul.f32 %v699_v13, %v639_v46  ;;  %v737_v50 = vadd.f32 %v733_v12, %v705_v37 }
  0xfa   :  { %v736_v11 = vadd.f32 %v732_v7, %v704_v35 }
  0xfb   :  { %v854_v18 = vpop.eup %853  ;;  %v735_v14 = vadd.f32 %v731_v1, %v703_v59  ;;  %v744_v42 = vsel %vm738_vm6, %v737_v50, 0.0 }
  0xfc   :  { %v823_v16 = vadd.f32 -1.0, %v854_v18  ;;  %v742_v39 = vsel %vm738_vm6, %v736_v11, 0.0 }
  0xfd   :  { %v740_v40 = vsel %vm738_vm6, %v735_v14, 0.0 }
  0xfe   :  { %v698_v56 = vsel %vm678_vm5, %v674_v21, %v823_v16  ;;  %v756_v21 = vpop.permute.xlu0 %755 }
  0xff   :  { %v702_v61 = vmul.f32 %v698_v56, %v638_v38  ;;  %v758_v44 = vperm.slane %v756_v21, 0 }
 0x101   :  { %v734_v0 = vadd.f32 %v730_v62, %v702_v61 }
 0x103   :  { %v739_v29 = vsel %vm738_vm6, %v734_v0, 0.0 }
 0x104   :  { %v741_v22 = vadd.f32 %v740_v40, %v739_v29 }
 0x106   :  { %v743_v43 = vadd.f32 %v742_v39, %v741_v22 }
 0x108   :  { %v745_v5 = vadd.f32 %v744_v42, %v743_v43 }
 0x10a   :  { %v746_v27 = vrot.slane %v745_v5, 4 }
 0x10c   :  { %v747_v6 = vadd.f32 %v746_v27, %v745_v5 }
 0x10e   :  { %v748_v28 = vrot.slane %v747_v6, 2 }
 0x110   :  { %v749_v52 = vadd.f32 %v748_v28, %v747_v6 }
 0x112   :  { %v750_v53 = vrot.slane %v749_v52, 1 }
 0x114   :  { %v751_v57 = vadd.f32 %v750_v53, %v749_v52 }
 0x116   :  { %v759_v10 = vadd.f32 %v758_v44, %v751_v57 }
 0x118   :  { %761 = vst.msk [vmem:[#allocation3] sm:$0x1] %vm760_vm7, %v759_v10 }
 0x119   :  { %772 = dma.vmem_to_hbm [thread:$0]  %s768_s3, 16, %s770_s4, [#allocation4]  }
 0x11a   :  { %879 = dma.done.wait [#allocation4], 16  }
 0x11b   :  { %880 = vsyncadd [#allocation4], 4294967280 }
 0x11c   :  { %777 = vsyncpa [#allocation4], 1 }

</bundles_post_ra>
